<compile_context>
chip_gen: v5e
topology: v5e:2x2
jax: 0.10.0
libtpu: 0.0.40
codegen_flags: <defaults>
</compile_context>

<pallas_src>
import functools

import jax
import jax.numpy as jnp
from jax.experimental import pallas as pl
from jax.experimental.pallas import tpu as pltpu

LANES = 128
TARGET_BLOCK_ROWS = 2048  # 2048*128*4B = 1 MiB per input block (fits v5e's 16 MiB default)


def _cdiv(a, b):
    return (a + b - 1) // b


def _round_up(a, b):
    return _cdiv(a, b) * b


def _dice_kernel(total, block_rows, blocks_per_split, needs_mask,
                 pred_ref, targ_ref, out_ref):
    """One grid step: stream a (block_rows, 128) tile of each input, apply sigmoid,
    accumulate three vreg-shaped partial sums into the per-split output block.

    out_ref: (1, 3, 8, 128) f32, resident across the inner ("arbitrary") grid axis:
      [0] = sum(sigmoid(pred) * targ), [1] = sum(sigmoid(pred)), [2] = sum(targ).
    """
    s = pl.program_id(0)  # split ("parallel") axis
    i = pl.program_id(1)  # reduction ("arbitrary") axis

    @pl.when(i == 0)
    def _():
        out_ref[...] = jnp.zeros_like(out_ref)

    p = jax.nn.sigmoid(pred_ref[...].astype(jnp.float32))
    t = targ_ref[...].astype(jnp.float32)

    if needs_mask:
        # Mask the ragged tail (and any duplicate/out-of-range blocks) by global
        # flat element index; pad/garbage elements contribute exactly zero.
        blk = s * blocks_per_split + i  # logical block index (may exceed n_blocks-1)
        row = jax.lax.broadcasted_iota(jnp.int32, p.shape, 0) + blk * block_rows
        lane = jax.lax.broadcasted_iota(jnp.int32, p.shape, 1)
        valid = row * LANES + lane < total
        p = jnp.where(valid, p, 0.0)
        t = jnp.where(valid, t, 0.0)

    pt = p * t

    def fold(x):
        # (block_rows, 128) -> (8, 128): pure elementwise vreg adds (VPU), no XLU.
        return x.reshape(-1, 8, LANES).sum(axis=0)

    out_ref[0, 0, :, :] += fold(pt)
    out_ref[0, 1, :, :] += fold(p)
    out_ref[0, 2, :, :] += fold(t)


def dice_loss(pred, targ, eps=1e-07):
    """JAX/Pallas equivalent of DiceLoss()(pred, targ) with Sigmoid activation."""
    assert pred.shape == targ.shape, "pred/targ shape mismatch"
    total = pred.size

    rows = _cdiv(total, LANES)
    if rows < TARGET_BLOCK_ROWS:
        block_rows = _round_up(rows, 8)  # single full-array block, sublane-aligned
        rows_padded = block_rows
    else:
        block_rows = TARGET_BLOCK_ROWS
        rows_padded = rows

    needed = rows_padded * LANES
    pred_flat = pred.reshape(-1)  # native dtype; kernel upcasts on load
    targ_flat = targ.reshape(-1)
    if needed != total:
        # Only hit when total isn't a multiple of 128 or the input is tiny; zero pad
        # values are masked out inside the kernel, so no sentinel tricks needed.
        pred_flat = jnp.pad(pred_flat, (0, needed - total))
        targ_flat = jnp.pad(targ_flat, (0, needed - total))

    pred2d = pred_flat.reshape(rows_padded, LANES)
    targ2d = targ_flat.reshape(rows_padded, LANES)

    n_blocks = _cdiv(rows_padded, block_rows)
    n_splits = 2 if n_blocks >= 2 else 1  # leading "parallel" axis -> v7x megacore
    blocks_per_split = _cdiv(n_blocks, n_splits)

    # Mask needed iff the grid-covered element range doesn't exactly equal `total`
    # (ragged last block, wrapper pad, or duplicate blocks from the split round-up).
    needs_mask = (n_splits * blocks_per_split * block_rows * LANES) != total

    def in_map(s, i):
        b = s * blocks_per_split + i
        # Clamp duplicate tail blocks to a valid block; their contribution is masked.
        return (jnp.minimum(b, n_blocks - 1), 0)

    partials = pl.pallas_call(
        functools.partial(_dice_kernel, total, block_rows, blocks_per_split, needs_mask),
        out_shape=jax.ShapeDtypeStruct((n_splits, 3, 8, LANES), jnp.float32),
        grid_spec=pltpu.PrefetchScalarGridSpec(
            num_scalar_prefetch=0,
            grid=(n_splits, blocks_per_split),
            in_specs=[
                pl.BlockSpec((block_rows, LANES), in_map),
                pl.BlockSpec((block_rows, LANES), in_map),
            ],
            out_specs=pl.BlockSpec((1, 3, 8, LANES), lambda s, i: (s, 0, 0, 0)),
        ),
        compiler_params=pltpu.CompilerParams(
            dimension_semantics=("parallel", "arbitrary"),
        ),
    )(pred2d, targ2d)

    # Tiny epilogue: single cross-lane reduction over (n_splits, 3, 8, 128) + ratio.
    sums = jnp.sum(partials, axis=(0, 2, 3))
    overlap_sum, pred_sum, targ_sum = sums[0], sums[1], sums[2]
    coeff = (2.0 * overlap_sum + eps) / (pred_sum + targ_sum + eps)
    return 1.0 - coeff


def _dice_loss_ref(pred, targ, eps=1e-07):
    p = jax.nn.sigmoid(pred.astype(jnp.float32))
    t = targ.astype(jnp.float32)
    coeff = (2.0 * jnp.sum(p * t) + eps) / (jnp.sum(p) + jnp.sum(t) + eps)
    return 1.0 - coeff


if __name__ == "__main__":
    key = jax.random.PRNGKey(0)
    k1, k2 = jax.random.split(key)
    # NCHW, same convention as the PyTorch module.
    pred = jax.random.normal(k1, (2, 4, 16, 16), dtype=jnp.float32)
    targ = (jax.random.uniform(k2, (2, 4, 16, 16)) > 0.5).astype(jnp.float32)

    loss = dice_loss(pred, targ)
    jax.block_until_ready(loss)

    ref = _dice_loss_ref(pred, targ)
    assert jnp.allclose(loss, ref, atol=1e-5, rtol=1e-5), (loss, ref)
    print("KERNEL_OK")
</pallas_src>

<mosaic_0001>
module attributes {stable_mosaic.version = 11 : i64} {
  func.func @_dice_kernel(%arg0: i32, %arg1: i32, %arg2: memref<16x128xf32, #tpu.memory_space<vmem>>, %arg3: memref<16x128xf32, #tpu.memory_space<vmem>>, %arg4: memref<1x3x8x128xf32, #tpu.memory_space<vmem>>) attributes {dimension_semantics = [#tpu.dimension_semantics<parallel>, #tpu.dimension_semantics<arbitrary>], iteration_bounds = array<i64: 1, 1>, scalar_prefetch = 0 : i64, scratch_operands = 0 : i64, tpu.core_type = #tpu.core_type<tc>, window_params = [{transform_indices = @transform_0, window_bounds = array<i64: 16, 128>}, {transform_indices = @transform_1, window_bounds = array<i64: 16, 128>}, {transform_indices = @transform_2, window_bounds = array<i64: 1, 3, 8, 128>}]} {
    %c0_i32 = arith.constant 0 : i32
    %0 = arith.cmpi eq, %arg1, %c0_i32 : i32
    %1 = arith.extui %0 : i1 to i32
    %c0_i32_0 = arith.constant 0 : i32
    %2 = arith.cmpi ne, %1, %c0_i32_0 : i32
    scf.if %2 {
      %cst_29 = arith.constant 0.000000e+00 : f32
      %35 = vector.broadcast %cst_29 : f32 to vector<1x3x8x128xf32>
      %c0_30 = arith.constant 0 : index
      %c0_31 = arith.constant 0 : index
      %c0_32 = arith.constant 0 : index
      %c0_33 = arith.constant 0 : index
      %36 = vector.load %arg4[%c0_30, %c0_31, %c0_32, %c0_33] : memref<1x3x8x128xf32, #tpu.memory_space<vmem>>, vector<1x3x8x128xf32>
      tpu.vector_store %arg4[%c0_30, %c0_31, %c0_32, %c0_33], %35 {strides = array<i32>} : memref<1x3x8x128xf32, #tpu.memory_space<vmem>>, vector<1x3x8x128xf32>,
    } else {
    }
    %c0 = arith.constant 0 : index
    %c0_1 = arith.constant 0 : index
    %3 = vector.load %arg2[%c0, %c0_1] : memref<16x128xf32, #tpu.memory_space<vmem>>, vector<16x128xf32>
    %4 = arith.negf %3 : vector<16x128xf32>
    %5 = math.exp %4 : vector<16x128xf32>
    %cst = arith.constant 1.000000e+00 : f32
    %6 = vector.broadcast %cst : f32 to vector<16x128xf32>
    %7 = arith.addf %6, %5 : vector<16x128xf32>
    %8 = arith.divf %6, %7 : vector<16x128xf32>
    %c0_2 = arith.constant 0 : index
    %c0_3 = arith.constant 0 : index
    %9 = vector.load %arg3[%c0_2, %c0_3] : memref<16x128xf32, #tpu.memory_space<vmem>>, vector<16x128xf32>
    %10 = arith.mulf %8, %9 : vector<16x128xf32>
    %c0_4 = arith.constant 0 : index
    %c0_5 = arith.constant 0 : index
    %c0_6 = arith.constant 0 : index
    %c0_7 = arith.constant 0 : index
    %11 = vector.load %arg4[%c0_4, %c0_5, %c0_6, %c0_7] : memref<1x3x8x128xf32, #tpu.memory_space<vmem>>, vector<1x1x8x128xf32>
    %12 = vector.shape_cast %11 : vector<1x1x8x128xf32> to vector<8x128xf32>
    %13 = vector.shape_cast %10 : vector<16x128xf32> to vector<2x8x128xf32>
    %cst_8 = arith.constant dense<0.000000e+00> : vector<8x128xf32>
    %14 = vector.multi_reduction <add>, %13, %cst_8 [0] : vector<2x8x128xf32> to vector<8x128xf32>
    %15 = arith.addf %12, %14 : vector<8x128xf32>
    %c0_9 = arith.constant 0 : index
    %c0_10 = arith.constant 0 : index
    %c0_11 = arith.constant 0 : index
    %c0_12 = arith.constant 0 : index
    %16 = vector.load %arg4[%c0_9, %c0_10, %c0_11, %c0_12] : memref<1x3x8x128xf32, #tpu.memory_space<vmem>>, vector<1x1x8x128xf32>
    %17 = vector.shape_cast %16 : vector<1x1x8x128xf32> to vector<8x128xf32>
    %18 = vector.shape_cast %15 : vector<8x128xf32> to vector<1x1x8x128xf32>
    tpu.vector_store %arg4[%c0_9, %c0_10, %c0_11, %c0_12], %18 {strides = array<i32>} : memref<1x3x8x128xf32, #tpu.memory_space<vmem>>, vector<1x1x8x128xf32>,
    %c0_13 = arith.constant 0 : index
    %c1 = arith.constant 1 : index
    %c0_14 = arith.constant 0 : index
    %c0_15 = arith.constant 0 : index
    %19 = vector.load %arg4[%c0_13, %c1, %c0_14, %c0_15] : memref<1x3x8x128xf32, #tpu.memory_space<vmem>>, vector<1x1x8x128xf32>
    %20 = vector.shape_cast %19 : vector<1x1x8x128xf32> to vector<8x128xf32>
    %21 = vector.shape_cast %8 : vector<16x128xf32> to vector<2x8x128xf32>
    %cst_16 = arith.constant dense<0.000000e+00> : vector<8x128xf32>
    %22 = vector.multi_reduction <add>, %21, %cst_16 [0] : vector<2x8x128xf32> to vector<8x128xf32>
    %23 = arith.addf %20, %22 : vector<8x128xf32>
    %c0_17 = arith.constant 0 : index
    %c1_18 = arith.constant 1 : index
    %c0_19 = arith.constant 0 : index
    %c0_20 = arith.constant 0 : index
    %24 = vector.load %arg4[%c0_17, %c1_18, %c0_19, %c0_20] : memref<1x3x8x128xf32, #tpu.memory_space<vmem>>, vector<1x1x8x128xf32>
    %25 = vector.shape_cast %24 : vector<1x1x8x128xf32> to vector<8x128xf32>
    %26 = vector.shape_cast %23 : vector<8x128xf32> to vector<1x1x8x128xf32>
    tpu.vector_store %arg4[%c0_17, %c1_18, %c0_19, %c0_20], %26 {strides = array<i32>} : memref<1x3x8x128xf32, #tpu.memory_space<vmem>>, vector<1x1x8x128xf32>,
    %c0_21 = arith.constant 0 : index
    %c2 = arith.constant 2 : index
    %c0_22 = arith.constant 0 : index
    %c0_23 = arith.constant 0 : index
    %27 = vector.load %arg4[%c0_21, %c2, %c0_22, %c0_23] : memref<1x3x8x128xf32, #tpu.memory_space<vmem>>, vector<1x1x8x128xf32>
    %28 = vector.shape_cast %27 : vector<1x1x8x128xf32> to vector<8x128xf32>
    %29 = vector.shape_cast %9 : vector<16x128xf32> to vector<2x8x128xf32>
    %cst_24 = arith.constant dense<0.000000e+00> : vector<8x128xf32>
    %30 = vector.multi_reduction <add>, %29, %cst_24 [0] : vector<2x8x128xf32> to vector<8x128xf32>
    %31 = arith.addf %28, %30 : vector<8x128xf32>
    %c0_25 = arith.constant 0 : index
    %c2_26 = arith.constant 2 : index
    %c0_27 = arith.constant 0 : index
    %c0_28 = arith.constant 0 : index
    %32 = vector.load %arg4[%c0_25, %c2_26, %c0_27, %c0_28] : memref<1x3x8x128xf32, #tpu.memory_space<vmem>>, vector<1x1x8x128xf32>
    %33 = vector.shape_cast %32 : vector<1x1x8x128xf32> to vector<8x128xf32>
    %34 = vector.shape_cast %31 : vector<8x128xf32> to vector<1x1x8x128xf32>
    tpu.vector_store %arg4[%c0_25, %c2_26, %c0_27, %c0_28], %34 {strides = array<i32>} : memref<1x3x8x128xf32, #tpu.memory_space<vmem>>, vector<1x1x8x128xf32>,
    return
  }
  func.func @transform_0(%arg0: i32, %arg1: i32) -> (i32, i32) {
    %c1_i32 = arith.constant 1 : i32
    %0 = arith.muli %arg0, %c1_i32 : i32
    %1 = arith.addi %0, %arg1 : i32
    %c0_i32 = arith.constant 0 : i32
    %2 = arith.minsi %1, %c0_i32 : i32
    %c0_i32_0 = arith.constant 0 : i32
    %c0_i32_1 = arith.constant 0 : i32
    return %2, %c0_i32_0 : i32, i32
  }
  func.func @transform_1(%arg0: i32, %arg1: i32) -> (i32, i32) {
    %c1_i32 = arith.constant 1 : i32
    %0 = arith.muli %arg0, %c1_i32 : i32
    %1 = arith.addi %0, %arg1 : i32
    %c0_i32 = arith.constant 0 : i32
    %2 = arith.minsi %1, %c0_i32 : i32
    %c0_i32_0 = arith.constant 0 : i32
    %c0_i32_1 = arith.constant 0 : i32
    return %2, %c0_i32_0 : i32, i32
  }
  func.func @transform_2(%arg0: i32, %arg1: i32) -> (i32, i32, i32, i32) {
    %c0_i32 = arith.constant 0 : i32
    %c0_i32_0 = arith.constant 0 : i32
    %c0_i32_1 = arith.constant 0 : i32
    %c0_i32_2 = arith.constant 0 : i32
    return %arg0, %c0_i32, %c0_i32_0, %c0_i32_1 : i32, i32, i32, i32
  }
}

</mosaic_0001>

<bundles_post_ra>
// kernel: tpu_custom_call.1
= control target key start
LH: loop header
LB: loop body
LE: loop exit
PB: predicated region body
PF: predicated region fallthrough
CT: control target
= control target key end

     0   :  { %7 = vsyncpa [#allocation3], 0  ;;  %s285_s0 = inlined_call_operand.hbm [shape: f32[16,128], index: 0, kind: input, shape index: {}]   ;;  %s286_s1 = inlined_call_operand.hbm [shape: f32[16,128], index: 1, kind: input, shape index: {}]   ;;  %s287_s2 = inlined_call_operand.hbm [shape: f32[1,3,8,128], index: 2, kind: output, shape index: {}]  }
   0x1   :  { %8 = vsyncpa [#allocation6], 0 }
   0x2   :  { %9 = vsyncpa [#allocation4], 0  ;;  %s20_s11 = sshll.u32 %s285_s0, 4  ;;  %s247_s12 = smov [#allocation2]   ;;  %s21_s11 = int_to_ptr.hbm [resolvable:$true] %s20_s11 }
   0x3   :  { %s22_s13 = sshll.u32 %s247_s12, 4  ;;  %s39_s16 = sshll.u32 %s286_s1, 4  ;;  %s23_s13 = int_to_ptr.vmem [resolvable:$true] %s22_s13  ;;  %s40_s16 = int_to_ptr.hbm [resolvable:$true] %s39_s16 }
   0x4   :  { %s248_s17 = smov 128   ;;  %s249_s18 = smov 8  }
   0x5   :  { %28 = dma.hbm_to_vmem [thread:$0]  %s21_s11, 256, %s23_s13, [#allocation3], %s248_s17, %s248_s17, %s249_s18  }
   0x6   :  { %s250_s19 = smov [#allocation5]  }
   0x7   :  { %s41_s20 = sshll.u32 %s250_s19, 4  ;;  %s42_s20 = int_to_ptr.vmem [resolvable:$true] %s41_s20 }
   0x8   :  { %47 = dma.hbm_to_vmem [thread:$0]  %s40_s16, 256, %s42_s20, [#allocation6], %s248_s17, %s248_s17, %s249_s18  }
   0x9   :  { %241 = dma.done.wait [#allocation3], 256  }
   0xa   :  { %242 = vsyncadd [#allocation3], 4294967040 }
   0xb   :  { %243 = dma.done.wait [#allocation6], 256  }
   0xc   :  { %244 = vsyncadd [#allocation6], 4294967040  ;;  %v71_v0 = vld [vmem:[#allocation2] sm:$0xff]  ;;  %v72_v1 = vld [vmem:[#allocation2 + $0x8] sm:$0xff]  ;;  %s251_s0 = smov [#allocation7]   ;;  %s135_s23 = sshll.u32 %s287_s2, 4  ;;  %s136_s23 = int_to_ptr.hbm [resolvable:$true] %s135_s23 }
   0xd   :  { %v153_v2 = vmul.f32 -1.442695, %v71_v0  ;;  %v154_v3 = vmul.f32 -1.442695, %v72_v1  ;;  %v111_v4 = vld [vmem:[#allocation5] sm:$0xff]  ;;  %v112_v5 = vld [vmem:[#allocation5 + $0x8] sm:$0xff] }
   0xe   :  { %v126_v6 = vadd.f32 %v112_v5, %v111_v4  ;;  %s133_s1 = sshll.u32 %s251_s0, 4  ;;  %s134_s1 = int_to_ptr.vmem [resolvable:$true] %s133_s1 }
   0xf   :  { %161 = vpow2.f32 %v153_v2 }
  0x10   :  { %163 = vpow2.f32 %v154_v3  ;;  %128 = vst [vmem:[#allocation7 + $0x10] sm:$0xff] %v126_v6 }
  0x15   :  { %v162_v7 = vpop.eup %161 }
  0x16   :  { %v164_v8 = vpop.eup %163  ;;  %v79_v9 = vadd.f32 1.0, %v162_v7 }
  0x17   :  { %v80_v10 = vadd.f32 1.0, %v164_v8 }
  0x18   :  { %165 = vrcp.f32 %v79_v9  ;;  %vm86_vm0 = vweird.f32 %v79_v9  ;;  %v92_v14 = vand.u32 2147483648, %v79_v9  ;;  %v90_v17 = vand.u32 2147483647, %v79_v9 }
  0x19   :  { %167 = vrcp.f32 %v80_v10  ;;  %v107_v18 = vand.u32 2147483648, %v80_v10  ;;  %vm101_vm2 = vweird.f32 %v80_v10  ;;  %v105_v20 = vand.u32 2147483647, %v80_v10 }
  0x1a   :  { %v93_v22 = vor.u32 1.1754944e-38, %v92_v14  ;;  %vm91_vm5 = vcmp.eq.f32.partialorder %v90_v17, 8.507059e+37 }
  0x1b   :  { %v108_v25 = vor.u32 1.1754944e-38, %v107_v18  ;;  %vm106_vm7 = vcmp.eq.f32.partialorder %v105_v20, 8.507059e+37 }
  0x1e   :  { %v166_v11 = vpop.eup %165 }
  0x1f   :  { %v168_v12 = vpop.eup %167  ;;  %v82_v13 = vmul.f32 %v166_v11, %v79_v9  ;;  %vm87_vm1 = vweird.f32 %v166_v11 }
  0x20   :  { %v97_v15 = vmul.f32 %v168_v12, %v80_v10  ;;  %vm102_vm3 = vweird.f32 %v168_v12  ;;  %vm88_vm4 = vmor %vm86_vm0, %vm87_vm1 }
  0x21   :  { %v83_v16 = vsub.f32 1.0, %v82_v13  ;;  %vm103_vm6 = vmor %vm101_vm2, %vm102_vm3 }
  0x22   :  { %v98_v19 = vsub.f32 1.0, %v97_v15 }
  0x23   :  { %v84_v21 = vmul.f32 %v166_v11, %v83_v16 }
  0x24   :  { %v99_v23 = vmul.f32 %v168_v12, %v98_v19 }
  0x25   :  { %v85_v24 = vadd.f32 %v166_v11, %v84_v21 }
  0x26   :  { %v100_v26 = vadd.f32 %v168_v12, %v99_v23 }
  0x27   :  { %v89_v27 = vsel %vm88_vm4, %v166_v11, %v85_v24 }
  0x28   :  { %v94_v28 = vsel %vm91_vm5, %v93_v22, %v89_v27  ;;  %v104_v29 = vsel %vm103_vm6, %v168_v12, %v100_v26 }
  0x29   :  { %v109_v30 = vsel %vm106_vm7, %v108_v25, %v104_v29  ;;  %v113_v31 = vmul.f32 %v111_v4, %v94_v28 }
  0x2a   :  { %v114_v32 = vmul.f32 %v112_v5, %v109_v30  ;;  %v121_v33 = vadd.f32 %v109_v30, %v94_v28 }
  0x2c   :  { %v116_v34 = vadd.f32 %v114_v32, %v113_v31  ;;  %123 = vst [vmem:[#allocation7 + $0x8] sm:$0xff] %v121_v33 }
  0x2e   :  { %118 = vst [vmem:[#allocation7] sm:$0xff] %v116_v34 }
  0x2f   :  { %141 = dma.vmem_to_hbm [thread:$0]  %s134_s1, 384, %s136_s23, [#allocation4], %s248_s17, %s248_s17, %s249_s18  }
  0x30   :  { %245 = dma.done.wait [#allocation4], 384  }
  0x31   :  { %246 = vsyncadd [#allocation4], 4294966912 }
  0x32   :  { %146 = vsyncpa [#allocation3], 1 }
  0x33   :  { %147 = vsyncpa [#allocation6], 1 }
  0x34   :  { %148 = vsyncpa [#allocation4], 1 }

</bundles_post_ra>
